<compile_context>
chip_gen: v6e
topology: v6e:2x2x1
jax: 0.10.0
libtpu: 0.0.40
codegen_flags: <defaults>
</compile_context>

<pallas_src>
import jax
import jax.numpy as jnp
from jax import lax
from jax.experimental import pallas as pl
from jax.experimental.pallas import tpu as pltpu

EMBEDDING_DIM = 10   # matches `embedding_dim = 10` in the reference script
GENRES_DIM = 20      # synthetic stand-in for the CountVectorizer vocab size
H1 = 456             # fc_user / fc_moive output dim
H2 = 216             # fc_user1 / fc_moive1 output dim

# Padded, vreg-friendly kernel shapes (zero padding; results unchanged).
KM_PAD = 32          # movie-tower input: 10 + 20 features + 1 bias row -> 32
KU_PAD = 16          # user-tower input : 10 features + 1 bias row      -> 16
LANE = 128


def _round_up(x, m):
    return (x + m - 1) // m * m


def two_tower_kernel(mf_ref, ue_ref, gm_ref, gu_ref, gxy_ref, out_ref):
    """One batch tile: cosine similarity via precomputed Gram matrices.

    mf_ref : (KM_PAD, TB)  movie features^T (bias-ones row included), f32
    ue_ref : (KU_PAD, TB)  user embeddings^T (bias-ones row included), f32
    gm_ref : (KM_PAD, KM_PAD)  Wm_eff^T Wm_eff, f32
    gu_ref : (KU_PAD, KU_PAD)  Wu_eff^T Wu_eff, f32
    gxy_ref: (KM_PAD, KU_PAD)  Wm_eff^T Wu_eff, f32
    out_ref: (1, TB)  cosine similarity, f32 (lane-dense store)
    """
    mf = mf_ref[...]
    ue = ue_ref[...]

    # Tiny f32 matmuls (MXU), f32 accumulation.
    gm_mf = jnp.dot(gm_ref[...], mf, preferred_element_type=jnp.float32)    # (KM_PAD, TB)
    gu_ue = jnp.dot(gu_ref[...], ue, preferred_element_type=jnp.float32)    # (KU_PAD, TB)
    gxy_ue = jnp.dot(gxy_ref[...], ue, preferred_element_type=jnp.float32)  # (KM_PAD, TB)

    # nn.Dropout(0.5) is the identity in eval/inference mode.
    # TODO(synk): training-mode dropout (stochastic mask via pltpu.prng_*) not implemented.

    # Quadratic forms per example (sublane reductions -> lane-dense (1, TB)):
    #   sx = ||x||^2, sy = ||y||^2, dxy = <x, y>.
    sx = jnp.sum(mf * gm_mf, axis=0, keepdims=True)
    sy = jnp.sum(ue * gu_ue, axis=0, keepdims=True)
    dxy = jnp.sum(mf * gxy_ue, axis=0, keepdims=True)

    # F.normalize(p=2, dim=1, eps=1e-12) on both towers + CosineSimilarity(dim=1)
    # collapses to dot(x, y) / (max(||x||, 1e-12) * max(||y||, 1e-12)).
    inv_nx = lax.rsqrt(jnp.maximum(sx, 1e-24))   # == 1 / max(||x||, 1e-12)
    inv_ny = lax.rsqrt(jnp.maximum(sy, 1e-24))
    out_ref[...] = dxy * inv_nx * inv_ny


def init_params(key, num_users, num_movies):
    """Deterministic parameter init (PyTorch-default-like uniform ranges).

    Linear weights are stored as (in_features, out_features) so y = x @ W + b.
    """
    ks = jax.random.split(key, 6)

    def linear(k, fan_in, fan_out):
        kw, kb = jax.random.split(k)
        bound = 1.0 / jnp.sqrt(jnp.float32(fan_in))
        w = jax.random.uniform(kw, (fan_in, fan_out), jnp.float32, -bound, bound)
        b = jax.random.uniform(kb, (1, fan_out), jnp.float32, -bound, bound)
        return w, b

    params = {}
    params["user_embedding"] = jax.random.normal(ks[0], (num_users, EMBEDDING_DIM), jnp.float32)
    params["movie_embedding"] = jax.random.normal(ks[1], (num_movies, EMBEDDING_DIM), jnp.float32)
    params["w_user"],   params["b_user"]   = linear(ks[2], EMBEDDING_DIM, H1)
    params["w_movie"],  params["b_movie"]  = linear(ks[3], EMBEDDING_DIM + GENRES_DIM, H1)
    params["w_user1"],  params["b_user1"]  = linear(ks[4], H1, H2)
    params["w_movie1"], params["b_movie1"] = linear(ks[5], H1, H2)
    return params


def _fold_tower(w1, b1, w2, b2, k_pad):
    """Compose the two Linears of a tower (no nonlinearity between them in the
    reference), fold the bias into an extra input row, and zero-pad the input
    dim to k_pad.  Returns (k_pad, H2) float32."""
    w_eff = w1 @ w2                                  # (k, H2)
    b_eff = b1 @ w2 + b2                             # (1, H2)
    w_aug = jnp.concatenate([w_eff, b_eff], axis=0)  # (k + 1, H2)
    return jnp.pad(w_aug, ((0, k_pad - w_aug.shape[0]), (0, 0)))


def _features_t(feats, k_pad, b_pad):
    """(B, k) features -> (k_pad, b_pad): append a ones column (bias), zero-pad
    features and batch, and transpose so batch maps to the lane dimension."""
    b, k = feats.shape
    f = jnp.concatenate([feats, jnp.ones((b, 1), feats.dtype)], axis=1)   # (B, k+1)
    f = jnp.pad(f, ((0, b_pad - b), (0, k_pad - (k + 1))))
    return f.T                                                            # (k_pad, b_pad)


def two_tower_forward(params, user_id, movie_id, genres, *, batch_tile=2048):
    """Embedding gathers + layout prep in plain JAX; Gram-form cosine in Pallas."""
    # NOTE: the gathers could be moved in-kernel with PrefetchScalarGridSpec +
    # pl.Element row gathers; kept in the wrapper for simplicity here.
    ue = params["user_embedding"][user_id]                                 # (B, 10)
    me = params["movie_embedding"][movie_id]                               # (B, 10)
    mf = jnp.concatenate([me, genres.astype(jnp.float32)], axis=1)         # (B, 30)

    B = ue.shape[0]
    b_lane = _round_up(B, LANE)
    n_tiles = -(-b_lane // batch_tile)               # ceil
    tb = _round_up(-(-b_lane // n_tiles), LANE)      # tight tile, multiple of 128 lanes
    b_pad = n_tiles * tb
    grid = (n_tiles,)

    # Fold towers in f32 and precompute the Gram matrices (f32, full precision).
    wm = _fold_tower(params["w_movie"], params["b_movie"],
                     params["w_movie1"], params["b_movie1"], KM_PAD)       # (32, H2)
    wu = _fold_tower(params["w_user"], params["b_user"],
                     params["w_user1"], params["b_user1"], KU_PAD)         # (16, H2)
    gm = wm @ wm.T                                                         # (32, 32)
    gu = wu @ wu.T                                                         # (16, 16)
    gxy = wm @ wu.T                                                        # (32, 16)

    mf_t = _features_t(mf, KM_PAD, b_pad)                                  # (32, b_pad) f32
    ue_t = _features_t(ue, KU_PAD, b_pad)                                  # (16, b_pad) f32

    sim = pl.pallas_call(
        two_tower_kernel,
        out_shape=jax.ShapeDtypeStruct((1, b_pad), jnp.float32),
        grid_spec=pltpu.PrefetchScalarGridSpec(
            num_scalar_prefetch=0,
            grid=grid,
            in_specs=[
                # Activation tiles stream along the batch (lane) axis.
                pl.BlockSpec((KM_PAD, tb), lambda i: (0, i)),
                pl.BlockSpec((KU_PAD, tb), lambda i: (0, i)),
                # Tiny Gram matrices stay resident across all batch tiles.
                pl.BlockSpec((KM_PAD, KM_PAD), lambda i: (0, 0)),
                pl.BlockSpec((KU_PAD, KU_PAD), lambda i: (0, 0)),
                pl.BlockSpec((KM_PAD, KU_PAD), lambda i: (0, 0)),
            ],
            out_specs=pl.BlockSpec((1, tb), lambda i: (0, i)),   # lane-dense output
        ),
        compiler_params=pltpu.CompilerParams(
            dimension_semantics=("parallel",),   # v7x: shard batch tiles across its 2 TCs
        ),
    )(mf_t, ue_t, gm, gu, gxy)

    return sim[0, :B]                            # (B,), like CosineSimilarity(dim=1)


def reference_forward(params, user_id, movie_id, genres):
    """Pure-JAX f32 reference mirroring the PyTorch forward exactly."""
    ue = params["user_embedding"][user_id]
    me = params["movie_embedding"][movie_id]
    mf = jnp.concatenate([me, genres.astype(jnp.float32)], axis=1)
    x = mf @ params["w_movie"] + params["b_movie"]
    x = x @ params["w_movie1"] + params["b_movie1"]
    y = ue @ params["w_user"] + params["b_user"]
    y = y @ params["w_user1"] + params["b_user1"]
    xn = x / jnp.maximum(jnp.linalg.norm(x, axis=1, keepdims=True), 1e-12)
    yn = y / jnp.maximum(jnp.linalg.norm(y, axis=1, keepdims=True), 1e-12)
    num = jnp.sum(xn * yn, axis=1)
    den = jnp.maximum(jnp.linalg.norm(xn, axis=1) * jnp.linalg.norm(yn, axis=1), 1e-8)
    return num / den


if __name__ == "__main__":
    key = jax.random.PRNGKey(0)
    k_params, k_uid, k_mid, k_gen = jax.random.split(key, 4)

    NUM_USERS = 16
    NUM_MOVIES = 12
    BATCH = 8

    params = init_params(k_params, NUM_USERS, NUM_MOVIES)

    user_id = jax.random.randint(k_uid, (BATCH,), 0, NUM_USERS)
    movie_id = jax.random.randint(k_mid, (BATCH,), 0, NUM_MOVIES)
    # CountVectorizer output is a non-negative integer count matrix; use 0/1 counts.
    genres = jax.random.bernoulli(k_gen, 0.3, (BATCH, GENRES_DIM)).astype(jnp.float32)

    sim = jax.jit(two_tower_forward)(params, user_id, movie_id, genres)
    sim = jax.block_until_ready(sim)

    ref = reference_forward(params, user_id, movie_id, genres)
    assert sim.shape == (BATCH,)
    assert bool(jnp.all(jnp.isfinite(sim)))
    assert bool(jnp.max(jnp.abs(sim - ref)) < 1e-2)
    print("KERNEL_OK")
</pallas_src>

<mosaic_0001>
module attributes {stable_mosaic.version = 11 : i64} {
  func.func @two_tower_kernel(%arg0: i32, %arg1: memref<32x128xf32, #tpu.memory_space<vmem>>, %arg2: memref<16x128xf32, #tpu.memory_space<vmem>>, %arg3: memref<32x32xf32, #tpu.memory_space<vmem>>, %arg4: memref<16x16xf32, #tpu.memory_space<vmem>>, %arg5: memref<32x16xf32, #tpu.memory_space<vmem>>, %arg6: memref<1x128xf32, #tpu.memory_space<vmem>>) attributes {dimension_semantics = [#tpu.dimension_semantics<parallel>], iteration_bounds = array<i64: 1>, scalar_prefetch = 0 : i64, scratch_operands = 0 : i64, tpu.core_type = #tpu.core_type<tc>, window_params = [{transform_indices = @transform_0, window_bounds = array<i64: 32, 128>}, {transform_indices = @transform_1, window_bounds = array<i64: 16, 128>}, {pipeline_mode = #tpu.pipeline_mode<synchronous>, transform_indices = @transform_2, window_bounds = array<i64: 32, 32>}, {pipeline_mode = #tpu.pipeline_mode<synchronous>, transform_indices = @transform_3, window_bounds = array<i64: 16, 16>}, {pipeline_mode = #tpu.pipeline_mode<synchronous>, transform_indices = @transform_4, window_bounds = array<i64: 32, 16>}, {transform_indices = @transform_5, window_bounds = array<i64: 1, 128>}]} {
    %c0 = arith.constant 0 : index
    %c0_0 = arith.constant 0 : index
    %0 = vector.load %arg1[%c0, %c0_0] : memref<32x128xf32, #tpu.memory_space<vmem>>, vector<32x128xf32>
    %c0_1 = arith.constant 0 : index
    %c0_2 = arith.constant 0 : index
    %1 = vector.load %arg2[%c0_1, %c0_2] : memref<16x128xf32, #tpu.memory_space<vmem>>, vector<16x128xf32>
    %c0_3 = arith.constant 0 : index
    %c0_4 = arith.constant 0 : index
    %2 = vector.load %arg3[%c0_3, %c0_4] : memref<32x32xf32, #tpu.memory_space<vmem>>, vector<32x32xf32>
    %cst = arith.constant dense<0.000000e+00> : vector<32x128xf32>
    %3 = tpu.matmul %2, %0, %cst {dimension_numbers = #tpu.dot_dimension_numbers<[1], [0], [0], [1], [0, 0, 1, 1], [], []>} : vector<32x32xf32>, vector<32x128xf32>, vector<32x128xf32> -> vector<32x128xf32>
    %c0_5 = arith.constant 0 : index
    %c0_6 = arith.constant 0 : index
    %4 = vector.load %arg4[%c0_5, %c0_6] : memref<16x16xf32, #tpu.memory_space<vmem>>, vector<16x16xf32>
    %cst_7 = arith.constant dense<0.000000e+00> : vector<16x128xf32>
    %5 = tpu.matmul %4, %1, %cst_7 {dimension_numbers = #tpu.dot_dimension_numbers<[1], [0], [0], [1], [0, 0, 1, 1], [], []>} : vector<16x16xf32>, vector<16x128xf32>, vector<16x128xf32> -> vector<16x128xf32>
    %c0_8 = arith.constant 0 : index
    %c0_9 = arith.constant 0 : index
    %6 = vector.load %arg5[%c0_8, %c0_9] : memref<32x16xf32, #tpu.memory_space<vmem>>, vector<32x16xf32>
    %cst_10 = arith.constant dense<0.000000e+00> : vector<32x128xf32>
    %7 = tpu.matmul %6, %1, %cst_10 {dimension_numbers = #tpu.dot_dimension_numbers<[1], [0], [0], [1], [0, 0, 1, 1], [], []>} : vector<32x16xf32>, vector<16x128xf32>, vector<32x128xf32> -> vector<32x128xf32>
    %8 = arith.mulf %0, %3 : vector<32x128xf32>
    %cst_11 = arith.constant dense<0.000000e+00> : vector<128xf32>
    %9 = vector.multi_reduction <add>, %8, %cst_11 [0] : vector<32x128xf32> to vector<128xf32>
    %10 = vector.shape_cast %9 : vector<128xf32> to vector<1x128xf32>
    %11 = arith.mulf %1, %5 : vector<16x128xf32>
    %cst_12 = arith.constant dense<0.000000e+00> : vector<128xf32>
    %12 = vector.multi_reduction <add>, %11, %cst_12 [0] : vector<16x128xf32> to vector<128xf32>
    %13 = vector.shape_cast %12 : vector<128xf32> to vector<1x128xf32>
    %14 = arith.mulf %0, %7 : vector<32x128xf32>
    %cst_13 = arith.constant dense<0.000000e+00> : vector<128xf32>
    %15 = vector.multi_reduction <add>, %14, %cst_13 [0] : vector<32x128xf32> to vector<128xf32>
    %16 = vector.shape_cast %15 : vector<128xf32> to vector<1x128xf32>
    %cst_14 = arith.constant 1.000000e-24 : f32
    %17 = vector.broadcast %cst_14 : f32 to vector<1x128xf32>
    %18 = arith.maximumf %10, %17 : vector<1x128xf32>
    %19 = math.rsqrt %18 : vector<1x128xf32>
    %cst_15 = arith.constant 1.000000e-24 : f32
    %20 = vector.broadcast %cst_15 : f32 to vector<1x128xf32>
    %21 = arith.maximumf %13, %20 : vector<1x128xf32>
    %22 = math.rsqrt %21 : vector<1x128xf32>
    %23 = arith.mulf %16, %19 : vector<1x128xf32>
    %24 = arith.mulf %23, %22 : vector<1x128xf32>
    %c0_16 = arith.constant 0 : index
    %c0_17 = arith.constant 0 : index
    %25 = vector.load %arg6[%c0_16, %c0_17] : memref<1x128xf32, #tpu.memory_space<vmem>>, vector<1x128xf32>
    tpu.vector_store %arg6[%c0_16, %c0_17], %24 {strides = array<i32>} : memref<1x128xf32, #tpu.memory_space<vmem>>, vector<1x128xf32>,
    return
  }
  func.func @transform_0(%arg0: i32) -> (i32, i32) {
    %c0_i32 = arith.constant 0 : i32
    %c0_i32_0 = arith.constant 0 : i32
    return %c0_i32, %arg0 : i32, i32
  }
  func.func @transform_1(%arg0: i32) -> (i32, i32) {
    %c0_i32 = arith.constant 0 : i32
    %c0_i32_0 = arith.constant 0 : i32
    return %c0_i32, %arg0 : i32, i32
  }
  func.func @transform_2(%arg0: i32) -> (i32, i32) {
    %c0_i32 = arith.constant 0 : i32
    %c0_i32_0 = arith.constant 0 : i32
    %c0_i32_1 = arith.constant 0 : i32
    return %c0_i32, %c0_i32_0 : i32, i32
  }
  func.func @transform_3(%arg0: i32) -> (i32, i32) {
    %c0_i32 = arith.constant 0 : i32
    %c0_i32_0 = arith.constant 0 : i32
    %c0_i32_1 = arith.constant 0 : i32
    return %c0_i32, %c0_i32_0 : i32, i32
  }
  func.func @transform_4(%arg0: i32) -> (i32, i32) {
    %c0_i32 = arith.constant 0 : i32
    %c0_i32_0 = arith.constant 0 : i32
    %c0_i32_1 = arith.constant 0 : i32
    return %c0_i32, %c0_i32_0 : i32, i32
  }
  func.func @transform_5(%arg0: i32) -> (i32, i32) {
    %c0_i32 = arith.constant 0 : i32
    %c0_i32_0 = arith.constant 0 : i32
    return %c0_i32, %arg0 : i32, i32
  }
}

</mosaic_0001>

<bundles_post_ra>
// kernel: two_tower_forward.1
= control target key start
LH: loop header
LB: loop body
LE: loop exit
PB: predicated region body
PF: predicated region fallthrough
CT: control target
= control target key end

     0   :  { %vm30_vm0 = vcmask 261120   ;;  %vm130_vm1 = vcmask 130048   ;;  %s525_s0 = inlined_call_operand.vmem [shape: f32[32,128], index: 0, kind: input, shape index: {}]   ;;  %s526_s1 = inlined_call_operand.vmem [shape: f32[16,128], index: 1, kind: input, shape index: {}]   ;;  %s527_s2 = inlined_call_operand.vmem [shape: f32[32,32], index: 2, kind: input, shape index: {}]   ;;  %s528_s3 = inlined_call_operand.vmem [shape: f32[16,16], index: 3, kind: input, shape index: {}]   ;;  %s529_s4 = inlined_call_operand.vmem [shape: f32[32,16], index: 4, kind: input, shape index: {}]   ;;  %s530_s5 = inlined_call_operand.vmem [shape: f32[1,128], index: 5, kind: output, shape index: {}]  }
   0x1   :  { %v455_v0 = vld [vmem:[%s525_s0 + $0x18] sm:$0xff]  ;;  %v460_v1 = vld [vmem:[%s525_s0 + $0x10] sm:$0xff]  ;;  %v25_v2 = vld [vmem:[%s526_s1 + $0x8] sm:$0xff] }
   0x2   :  { %387 = vmatprep.subr.mxu0 %v455_v0  ;;  %v24_v3 = vld [vmem:[%s526_s1] sm:$0xff]  ;;  %v21_v4 = vld [vmem:[%s525_s0 + $0x8] sm:$0xff]  ;;  %401 = vmatprep.subr.mxu1 %v25_v2  ;;  %v28_v10 = vld [vmem:[%s527_s2 + $0x10] sm:$0xff] }
   0x3   :  { %388 = vmatpush3.msra.mxu0 %v455_v0  ;;  %v26_v5 = vld [vmem:[%s527_s2] sm:$0xff]  ;;  %402 = vmatpush3.msra.mxu1 %v25_v2  ;;  %v129_v8 = vld [vmem:[%s528_s3 + $0x8] sm:$0xff]  ;;  %v29_v12 = vld [vmem:[%s527_s2 + $0x18] sm:$0xff] }
   0x4   :  { %389 = vmatprep.subr.mxu0 %v460_v1  ;;  %v20_v6 = vld [vmem:[%s525_s0] sm:$0xff]  ;;  %403 = vmatprep.subr.mxu1 %v24_v3  ;;  %v27_v9 = vld [vmem:[%s527_s2 + $0x8] sm:$0xff]  ;;  %v214_v14 = vld [vmem:[%s529_s4 + $0x10] sm:$0xff] }
   0x5   :  { %390 = vmatpush3.msra.mxu0 %v460_v1  ;;  %v128_v7 = vld [vmem:[%s528_s3] sm:$0xff]  ;;  %395 = vmatprep.mubr.msk.f32.mxu0 %vm30_vm0, %v26_v5  ;;  %v213_v13 = vld [vmem:[%s529_s4 + $0x8] sm:$0xff]  ;;  %v215_v15 = vld [vmem:[%s529_s4 + $0x18] sm:$0xff] }
   0x6   :  { %391 = vmatprep.subr.mxu0 %v21_v4  ;;  %404 = vmatpush3.msra.mxu1 %v24_v3  ;;  %v212_v11 = vld [vmem:[%s529_s4] sm:$0xff] }
   0x7   :  { %392 = vmatpush3.msra.mxu0 %v21_v4  ;;  %405 = vmatprep.mubr.msk.f32.mxu1 %vm130_vm1, %v128_v7 }
   0x8   :  { %393 = vmatprep.subr.mxu0 %v20_v6  ;;  %406 = vmatmul.mubr.msk.f32.vlgmr.msra.gmra.mxu1 %vm130_vm1, %v129_v8 }
   0x9   :  { %394 = vmatpush3.msra.mxu0 %v20_v6  ;;  %408 = vmatprep.subr.mxu1 %v25_v2 }
   0xa   :  { %396 = vmatmul.mubr.msk.f32.vlgmr.msra.gmra.mxu0 %vm30_vm0, %v27_v9  ;;  %409 = vmatpush3.msra.mxu1 %v25_v2 }
   0xb   :  { %398 = vmatprep.mubr.msk.f32.mxu0 %vm30_vm0, %v28_v10  ;;  %410 = vmatprep.subr.mxu1 %v24_v3 }
   0xc   :  { %412 = vmatprep.mubr.msk.f32.mxu1 %vm130_vm1, %v212_v11  ;;  %411 = vmatpush3.msra.mxu1 %v24_v3 }
   0xd   :  { %413 = vmatmul.mubr.msk.f32.vlgmr.msra.gmra.mxu1 %vm130_vm1, %v213_v13 }
   0xe   :  { %399 = vmatmul.mubr.msk.f32.gmra.mxu0 %vm30_vm0, %v29_v12  ;;  %415 = vmatprep.mubr.msk.f32.mxu1 %vm130_vm1, %v214_v14 }
  0x11   :  { %416 = vmatmul.mubr.msk.f32.gmra.mxu1 %vm130_vm1, %v215_v15 }
  0xc8   :  { %v407_v16 = vpop.f32.mrf.mxu1 }
  0xc9   :  { %v327_v18 = vmul.f32 %v407_v16, %v25_v2 }
  0xca   :  { %v397_v17 = vpop.f32.mrf.mxu0  ;;  %v203_v19 = vpop.f32.mrf.mxu1 }
  0xcb   :  { %v326_v21 = vmul.f32 %v203_v19, %v24_v3  ;;  %v314_v26 = vmul.f32 %v397_v17, %v21_v4 }
  0xcc   :  { %v109_v20 = vpop.f32.mrf.mxu0 }
  0xcd   :  { %v313_v22 = vmul.f32 %v109_v20, %v20_v6  ;;  %v328_v23 = vadd.f32 %v327_v18, %v326_v21  ;;  %v414_v25 = vpop.f32.mrf.mxu1 }
  0xce   :  { %v400_v24 = vpop.f32.mrf.mxu0  ;;  %v336_v27 = vmul.f32 %v414_v25, %v21_v4 }
  0xcf   :  { %v329_v28 = vrot.slane %v328_v23, 4  ;;  %v294_v30 = vpop.f32.mrf.mxu1  ;;  %v317_v31 = vadd.f32 %v314_v26, %v313_v22  ;;  %v316_v36 = vmul.f32 %v400_v24, %v455_v0 }
  0xd0   :  { %v119_v29 = vpop.f32.mrf.mxu0  ;;  %v335_v33 = vmul.f32 %v294_v30, %v20_v6 }
  0xd1   :  { %v315_v32 = vmul.f32 %v119_v29, %v460_v1  ;;  %v330_v34 = vadd.f32 %v329_v28, %v328_v23  ;;  %v417_v35 = vpop.f32.mrf.mxu1 }
  0xd2   :  { %v339_v38 = vadd.f32 %v336_v27, %v335_v33  ;;  %v338_v42 = vmul.f32 %v417_v35, %v455_v0 }
  0xd3   :  { %v318_v37 = vadd.f32 %v317_v31, %v315_v32  ;;  %v331_v39 = vrot.slane %v330_v34, 2  ;;  %v304_v40 = vpop.f32.mrf.mxu1 }
  0xd4   :  { %v337_v43 = vmul.f32 %v304_v40, %v460_v1 }
  0xd5   :  { %v319_v41 = vadd.f32 %v318_v37, %v316_v36  ;;  %v332_v44 = vadd.f32 %v331_v39, %v330_v34 }
  0xd6   :  { %v340_v46 = vadd.f32 %v339_v38, %v337_v43 }
  0xd7   :  { %v320_v45 = vrot.slane %v319_v41, 4  ;;  %v333_v49 = vrot.slane %v332_v44, 1 }
  0xd8   :  { %v341_v48 = vadd.f32 %v340_v46, %v338_v42 }
  0xd9   :  { %v321_v47 = vadd.f32 %v320_v45, %v319_v41  ;;  %v334_v53 = vadd.f32 %v333_v49, %v332_v44 }
  0xda   :  { %v342_v52 = vrot.slane %v341_v48, 4 }
  0xdb   :  { %v322_v50 = vrot.slane %v321_v47, 2  ;;  %v350_v57 = vmax.f32 %v334_v53, 1e-24 }
  0xdc   :  { %v343_v56 = vadd.f32 %v342_v52, %v341_v48 }
  0xdd   :  { %v323_v51 = vadd.f32 %v322_v50, %v321_v47 }
  0xde   :  { %v344_v59 = vrot.slane %v343_v56, 2 }
  0xdf   :  { %v324_v54 = vrot.slane %v323_v51, 1 }
  0xe0   :  { %v345_v60 = vadd.f32 %v344_v59, %v343_v56 }
  0xe1   :  { %v325_v55 = vadd.f32 %v324_v54, %v323_v51 }
  0xe2   :  { %v346_v61 = vrot.slane %v345_v60, 1 }
  0xe3   :  { %v348_v58 = vmax.f32 %v325_v55, 1e-24 }
  0xe4   :  { %v347_v62 = vadd.f32 %v346_v61, %v345_v60 }
  0xe5   :  { %418 = vrsqrt.f32 %v348_v58 }
  0xe6   :  { %420 = vrsqrt.f32 %v350_v57 }
  0xf2   :  { %v419_v63 = vpop.eup %418 }
  0xf3   :  { %v352_v0 = vmul.f32 %v419_v63, %v347_v62  ;;  %v421_v1 = vpop.eup %420 }
  0xf5   :  { %v353_v2 = vmul.f32 %v421_v1, %v352_v0 }
  0xf7   :  { %354 = vst [vmem:[%s530_s5] sm:$0x1] %v353_v2 }

</bundles_post_ra>
